<compile_context>
chip_gen: v6e
topology: v6e:2x2x1
jax: 0.10.0
libtpu: 0.0.40
codegen_flags: <defaults>
</compile_context>

<pallas_src>
import jax
import jax.numpy as jnp
from jax.experimental import pallas as pl
from jax.experimental.pallas import tpu as pltpu


def _node_embedding_kernel(packed_ref, table_ref, out_ref):
    """packed_ref: [TN, 8] f32   (cols 0..2 = shifted indices, 3..5 = other feats)
       table_ref : [Vtot+3, 3E+3] f32 block-diagonal fused table (VMEM-resident)
       out_ref   : [TN, 3E+3]   f32
    """
    tn = packed_ref.shape[0]
    vtot = table_ref.shape[0] - 3

    packed = packed_ref[...]                              # [tn, 8]
    a_idx = packed[:, 0:1].astype(jnp.int32)              # already offset 0
    v_idx = packed[:, 1:2].astype(jnp.int32)              # offset +num_atomic
    h_idx = packed[:, 2:3].astype(jnp.int32)              # offset +num_atomic+num_valence
    other = packed[:, 3:6]                                # [tn, 3] float32

    lane = jax.lax.broadcasted_iota(jnp.int32, (tn, vtot), 1)
    # The three one-hots live in disjoint column ranges, so OR-ing the three
    # comparisons builds the combined one-hot in one [tn, vtot] vreg block.
    onehot = ((lane == a_idx) | (lane == v_idx) | (lane == h_idx)).astype(jnp.float32)

    # [tn, vtot+3]: one-hot lanes followed by the raw other-feature values.
    x = jnp.concatenate([onehot, other], axis=1)

    # Single MXU matmul + single contiguous full-row store (lane-dense output).
    out_ref[...] = jnp.dot(
        x, table_ref[...],
        preferred_element_type=jnp.float32,
        precision=jax.lax.Precision.HIGHEST,
    )


def node_embedding_pallas(atomic, valence, formal_charge, aromatic,
                          hybridization, radical_electrons,
                          atomic_table, valence_table, hyb_table,
                          *, tn=512):
    """Pallas implementation of NodeEmbedding.forward."""
    N = atomic.shape[0]
    num_atomic, E = atomic_table.shape
    num_valence = valence_table.shape[0]
    num_hyb = hyb_table.shape[0]
    vtot = num_atomic + num_valence + num_hyb
    d_out = 3 * E + 3
    f32 = jnp.float32

    # ---- plain-JAX glue (table fusion + input packing) ----------------------
    # Block-diagonal fused table: rows 0:A -> cols 0:E, rows A:A+V -> cols E:2E,
    # rows A+V:Vtot -> cols 2E:3E, last 3 identity rows -> cols 3E:3E+3.
    combined = jnp.zeros((vtot + 3, d_out), f32)
    combined = combined.at[0:num_atomic, 0:E].set(atomic_table.astype(f32))
    combined = combined.at[num_atomic:num_atomic + num_valence, E:2 * E].set(
        valence_table.astype(f32))
    combined = combined.at[num_atomic + num_valence:vtot, 2 * E:3 * E].set(
        hyb_table.astype(f32))
    combined = combined.at[vtot:vtot + 3, 3 * E:3 * E + 3].set(jnp.eye(3, dtype=f32))

    # One packed [N, 8] float32 input: shifted indices + other features + pad.
    packed = jnp.stack([
        atomic.astype(f32),
        valence.astype(f32) + num_atomic,
        hybridization.astype(f32) + num_atomic + num_valence,
        formal_charge.astype(f32),
        aromatic.astype(f32),
        radical_electrons.astype(f32),
        jnp.zeros((N,), f32),
        jnp.zeros((N,), f32),
    ], axis=1)

    # Row tile: multiple of 8, clamped to the (rounded-up) problem size.
    tn_eff = min(int(tn), max(8, ((N + 7) // 8) * 8))
    tn_eff = ((tn_eff + 7) // 8) * 8
    n_pad = pl.cdiv(N, tn_eff) * tn_eff
    if n_pad != N:
        packed = jnp.pad(packed, ((0, n_pad - N), (0, 0)))

    grid = (n_pad // tn_eff,)

    out = pl.pallas_call(
        _node_embedding_kernel,
        out_shape=jax.ShapeDtypeStruct((n_pad, d_out), f32),
        grid=grid,
        in_specs=[
            # Row-tiled packed features: pipelined across the grid.
            pl.BlockSpec((tn_eff, 8), lambda i: (i, 0)),
            # Fused table: full-array block, resident in VMEM for all tiles.
            pl.BlockSpec((vtot + 3, d_out), lambda i: (0, 0)),
        ],
        out_specs=pl.BlockSpec((tn_eff, d_out), lambda i: (i, 0)),
        compiler_params=pltpu.CompilerParams(
            dimension_semantics=("parallel",)),
    )(packed, combined)

    return out[:N]


def node_embedding_ref(atomic, valence, formal_charge, aromatic,
                       hybridization, radical_electrons,
                       atomic_table, valence_table, hyb_table):
    """Plain-JAX reference matching the PyTorch forward."""
    ae = jnp.take(atomic_table, atomic, axis=0)
    ve = jnp.take(valence_table, valence, axis=0)
    he = jnp.take(hyb_table, hybridization, axis=0)
    other = jnp.stack([formal_charge, aromatic, radical_electrons],
                      axis=1).astype(jnp.float32)
    return jnp.concatenate([ae, ve, he, other], axis=1)


def _make_inputs(key, N, num_atomic, num_valence, num_hyb, E):
    k_at, k_vt, k_ht, k_a, k_v, k_fc, k_ar, k_h, k_re = jax.random.split(key, 9)
    atomic_table = jax.random.normal(k_at, (num_atomic, E), jnp.float32)
    valence_table = jax.random.normal(k_vt, (num_valence, E), jnp.float32)
    hyb_table = jax.random.normal(k_ht, (num_hyb, E), jnp.float32)
    atomic = jax.random.randint(k_a, (N,), 0, num_atomic, jnp.int32)
    valence = jax.random.randint(k_v, (N,), 0, num_valence, jnp.int32)
    hybridization = jax.random.randint(k_h, (N,), 0, num_hyb, jnp.int32)
    formal_charge = jax.random.randint(k_fc, (N,), -1, 2, jnp.int32).astype(jnp.float32)
    aromatic = jax.random.randint(k_ar, (N,), 0, 2, jnp.int32).astype(jnp.float32)
    radical_electrons = jax.random.randint(k_re, (N,), 0, 3, jnp.int32).astype(jnp.float32)
    return (atomic, valence, formal_charge, aromatic, hybridization,
            radical_electrons, atomic_table, valence_table, hyb_table)


if __name__ == "__main__":
    num_atomic, num_valence, num_hybridization = 16, 8, 8
    embedding_dim = 32

    key = jax.random.PRNGKey(0)
    k1, k2 = jax.random.split(key)

    # Case 1: small graph (N=8), single tile.
    args = _make_inputs(k1, 8, num_atomic, num_valence, num_hybridization,
                        embedding_dim)
    out = jax.block_until_ready(node_embedding_pallas(*args))
    ref = node_embedding_ref(*args)
    assert out.shape == (8, 3 * embedding_dim + 3), out.shape
    assert jnp.allclose(out, ref, atol=1e-5, rtol=1e-5), "mismatch vs reference (N=8)"

    # Case 2: N=50 with a small tile (tn=16) to exercise the grid + padded tail.
    args2 = _make_inputs(k2, 50, num_atomic, num_valence, num_hybridization,
                         embedding_dim)
    out2 = jax.block_until_ready(node_embedding_pallas(*args2, tn=16))
    ref2 = node_embedding_ref(*args2)
    assert out2.shape == (50, 3 * embedding_dim + 3), out2.shape
    assert jnp.allclose(out2, ref2, atol=1e-5, rtol=1e-5), "mismatch vs reference (N=50)"

    print("KERNEL_OK")
</pallas_src>

<mosaic_0001>
module attributes {stable_mosaic.version = 11 : i64} {
  func.func @_node_embedding_kernel(%arg0: i32, %arg1: memref<8x8xf32, #tpu.memory_space<vmem>>, %arg2: memref<35x99xf32, #tpu.memory_space<vmem>>, %arg3: memref<8x99xf32, #tpu.memory_space<vmem>>) attributes {dimension_semantics = [#tpu.dimension_semantics<parallel>], iteration_bounds = array<i64: 1>, scalar_prefetch = 0 : i64, scratch_operands = 0 : i64, tpu.core_type = #tpu.core_type<tc>, window_params = [{transform_indices = @transform_0, window_bounds = array<i64: 8, 8>}, {pipeline_mode = #tpu.pipeline_mode<synchronous>, transform_indices = @transform_1, window_bounds = array<i64: 35, 99>}, {transform_indices = @transform_2, window_bounds = array<i64: 8, 99>}]} {
    %c0 = arith.constant 0 : index
    %c0_0 = arith.constant 0 : index
    %0 = vector.load %arg1[%c0, %c0_0] : memref<8x8xf32, #tpu.memory_space<vmem>>, vector<8x8xf32>
    %1 = vector.extract_strided_slice %0 {offsets = [0, 0], sizes = [8, 1], strides = [1, 1]} : vector<8x8xf32> to vector<8x1xf32>
    %2 = arith.fptosi %1 : vector<8x1xf32> to vector<8x1xi32>
    %3 = vector.extract_strided_slice %0 {offsets = [0, 1], sizes = [8, 1], strides = [1, 1]} : vector<8x8xf32> to vector<8x1xf32>
    %4 = arith.fptosi %3 : vector<8x1xf32> to vector<8x1xi32>
    %5 = vector.extract_strided_slice %0 {offsets = [0, 2], sizes = [8, 1], strides = [1, 1]} : vector<8x8xf32> to vector<8x1xf32>
    %6 = arith.fptosi %5 : vector<8x1xf32> to vector<8x1xi32>
    %7 = vector.extract_strided_slice %0 {offsets = [0, 3], sizes = [8, 3], strides = [1, 1]} : vector<8x8xf32> to vector<8x3xf32>
    %8 = tpu.iota {dimensions = array<i32: 1>} : vector<8x32xi32>
    %9 = vector.broadcast %2 : vector<8x1xi32> to vector<8x32xi32>
    %10 = arith.cmpi eq, %8, %9 : vector<8x32xi32>
    %11 = vector.broadcast %4 : vector<8x1xi32> to vector<8x32xi32>
    %12 = arith.cmpi eq, %8, %11 : vector<8x32xi32>
    %13 = arith.ori %10, %12 : vector<8x32xi1>
    %14 = vector.broadcast %6 : vector<8x1xi32> to vector<8x32xi32>
    %15 = arith.cmpi eq, %8, %14 : vector<8x32xi32>
    %16 = arith.ori %13, %15 : vector<8x32xi1>
    %17 = arith.extui %16 : vector<8x32xi1> to vector<8x32xi32>
    %18 = arith.sitofp %17 : vector<8x32xi32> to vector<8x32xf32>
    %19 = tpu.concatenate %18, %7 in 1 : vector<8x32xf32>, vector<8x3xf32> -> vector<8x35xf32>
    %c0_1 = arith.constant 0 : index
    %c0_2 = arith.constant 0 : index
    %20 = vector.load %arg2[%c0_1, %c0_2] : memref<35x99xf32, #tpu.memory_space<vmem>>, vector<35x99xf32>
    %cst = arith.constant dense<0.000000e+00> : vector<8x99xf32>
    %21 = tpu.matmul %19, %20, %cst {dimension_numbers = #tpu.dot_dimension_numbers<[1], [0], [0], [1], [0, 0, 1, 1], [], []>, precision = #tpu.contract_precision<fp32>} : vector<8x35xf32>, vector<35x99xf32>, vector<8x99xf32> -> vector<8x99xf32>
    %c0_3 = arith.constant 0 : index
    %c0_4 = arith.constant 0 : index
    %22 = vector.load %arg3[%c0_3, %c0_4] : memref<8x99xf32, #tpu.memory_space<vmem>>, vector<8x99xf32>
    tpu.vector_store %arg3[%c0_3, %c0_4], %21 {strides = array<i32>} : memref<8x99xf32, #tpu.memory_space<vmem>>, vector<8x99xf32>,
    return
  }
  func.func @transform_0(%arg0: i32) -> (i32, i32) {
    %c0_i32 = arith.constant 0 : i32
    %c0_i32_0 = arith.constant 0 : i32
    return %arg0, %c0_i32 : i32, i32
  }
  func.func @transform_1(%arg0: i32) -> (i32, i32) {
    %c0_i32 = arith.constant 0 : i32
    %c0_i32_0 = arith.constant 0 : i32
    %c0_i32_1 = arith.constant 0 : i32
    return %c0_i32, %c0_i32_0 : i32, i32
  }
  func.func @transform_2(%arg0: i32) -> (i32, i32) {
    %c0_i32 = arith.constant 0 : i32
    %c0_i32_0 = arith.constant 0 : i32
    return %arg0, %c0_i32 : i32, i32
  }
}

</mosaic_0001>

<bundles_post_ra>
// kernel: tpu_custom_call.1
= control target key start
LH: loop header
LB: loop body
LE: loop exit
PB: predicated region body
PF: predicated region fallthrough
CT: control target
= control target key end

     0   :  { %7 = vsyncpa [#allocation3], 0  ;;  %s946_s0 = inlined_call_operand.hbm [shape: f32[8,8], index: 0, kind: input, shape index: {}]   ;;  %s947_s1 = inlined_call_operand.hbm [shape: f32[35,99], index: 1, kind: input, shape index: {}]   ;;  %s948_s2 = inlined_call_operand.hbm [shape: f32[8,99], index: 2, kind: output, shape index: {}]  }
   0x1   :  { %8 = vsyncpa [#allocation6], 0 }
   0x2   :  { %9 = vsyncpa [#allocation4], 0  ;;  %s791_s9 = smov [#allocation2]   ;;  %s792_s11 = smov [#allocation5]  }
   0x3   :  { %s16_s10 = sshll.u32 %s791_s9, 4  ;;  %s25_s12 = sshll.u32 %s792_s11, 4  ;;  %s17_s10 = int_to_ptr.vmem [resolvable:$true] %s16_s10  ;;  %s26_s12 = int_to_ptr.vmem [resolvable:$true] %s25_s12 }
   0x4   :  { %s733_s13 = scalar_lea.vmem %s17_s10, 128  ;;  %p738_p1 = scmp.lt.s32.totalorder %s17_s10, %s17_s10 }
   0x5   :  { %p734_p0 = scmp.ne.s32.totalorder %s17_s10, %s733_s13  ;;  %p739_p2 = scmp.lt.s32.totalorder %s733_s13, %s733_s13 }
   0x7   :  { %p740_p3 = por %p739_p2, %p738_p1 }
   0x9   :  { %p741_p4 = pnand %p740_p3, %p734_p0 }
   0xb   :  { %744 = shalt.err (!%p741_p4)
}
   0xc   :  { %19 = dma.hbm_to_vmem [thread:$0]  %s946_s0, 128, %s17_s10, [#allocation3]  }
   0xd   :  { %s753_s16 = scalar_lea.vmem %s26_s12, 640  ;;  %p758_p6 = scmp.lt.s32.totalorder %s26_s12, %s26_s12 }
   0xe   :  { %p754_p5 = scmp.ne.s32.totalorder %s26_s12, %s753_s16  ;;  %p759_p7 = scmp.lt.s32.totalorder %s753_s16, %s753_s16 }
  0x10   :  { %p760_p8 = por %p759_p7, %p758_p6 }
  0x12   :  { %p761_p9 = pnand %p760_p8, %p754_p5 }
  0x14   :  { %764 = shalt.err (!%p761_p9)
}
  0x15   :  { %s793_s17 = smov 128   ;;  %s794_s18 = smov 8  }
  0x16   :  { %31 = dma.hbm_to_vmem [thread:$0]  %s947_s1, 640, %s26_s12, [#allocation6], %s793_s17, %s793_s17, %s794_s18  }
  0x17   :  { %785 = dma.done.wait [#allocation3], 128  }
  0x18   :  { %786 = vsyncadd [#allocation3], 4294967168 }
  0x19   :  { %787 = dma.done.wait [#allocation6], 640  }
  0x1a   :  { %788 = vsyncadd [#allocation6], 4294966656  ;;  %v795_v0 = vmov 0   ;;  %v796_v1 = vmov 2   ;;  %vm73_vm0 = vcmask 1042432   ;;  %v38_v2 = vld [vmem:[#allocation2] sm:$0xff]  ;;  %v40_v38 = vlaneseq }
  0x1b   :  { %721 = vset.pattern.permute.xlu0 %v795_v0  ;;  %723 = vset.pattern.permute.xlu1 %v796_v1  ;;  %v68_v3 = vld [vmem:[#allocation5 + $0x20] sm:$0x7]  ;;  %v67_v4 = vld [vmem:[#allocation5 + $0x18] sm:$0xff]  ;;  %v708_v5 = vtrunc.f32 %v38_v2  ;;  %v66_v8 = vld [vmem:[#allocation5 + $0x10] sm:$0xff]  ;;  %v797_v11 = vmov 0.0   ;;  %v798_v30 = vmov 1  }
  0x1c   :  { %v75_v6 = vsel %vm73_vm0, %v68_v3, 0  ;;  %v824_v7 = vand.u32 4294901760, %v67_v4  ;;  %v65_v9 = vld [vmem:[#allocation5 + $0x8] sm:$0xff]  ;;  %v64_v10 = vld [vmem:[#allocation5] sm:$0xff]  ;;  %643 = vmatprep.subr.mxu1 %v797_v11  ;;  %v829_v13 = vand.u32 4294901760, %v66_v8  ;;  %630 = vmatprep.subr.mxu0 %v797_v11  ;;  %s799_s0 = smov 29  }
  0x1d   :  { %v827_v12 = vand.u32 4294901760, %v75_v6  ;;  %v831_v14 = vand.u32 4294901760, %v65_v9  ;;  %v834_v15 = vand.u32 4294901760, %v64_v10  ;;  %v709_v16 = vcvt.f32.s32 %v708_v5  ;;  %s801_s1 = smov [#allocation7]  }
  0x1e   :  { %v837_v17 = vsub.f32 %v67_v4, %v824_v7  ;;  %v843_v19 = vsub.f32 %v66_v8, %v829_v13  ;;  %vm800_vm1 = vmmov 0   ;;  %v41_v41 = vand.u32 127, %v40_v38  ;;  %s583_s21 = sshll.u32 %s801_s1, 4  ;;  %s584_s21 = int_to_ptr.vmem [resolvable:$true] %s583_s21 }
  0x1f   :  { %v840_v18 = vsub.f32 %v75_v6, %v827_v12  ;;  %v846_v20 = vsub.f32 %v65_v9, %v831_v14  ;;  %631 = vmatpush3.msra.mxu0 %v827_v12  ;;  %v850_v21 = vsub.f32 %v64_v10, %v834_v15  ;;  %43 = vperm.xlu0 %721, %v709_v16   ;;  %vm62_vm6 = vcmask 261120   ;;  %s765_s22 = scalar_lea.vmem %s584_s21, 128  ;;  %p770_p11 = scmp.lt.s32.totalorder %s584_s21, %s584_s21 }
  0x20   :  { %52 = vperm.xlu1 %723, %v709_v16   ;;  %v189_v22 = vand.u32 4294901760, %v837_v17  ;;  %v196_v24 = vand.u32 4294901760, %v843_v19  ;;  %632 = vmatprep.subr.mxu0 %v797_v11  ;;  %vm69_vm8 = vcmask 285696   ;;  %vm575_vm9 = vcmask 809984   ;;  %p766_p10 = scmp.ne.s32.totalorder %s584_s21, %s765_s22  ;;  %p771_p12 = scmp.lt.s32.totalorder %s765_s22, %s765_s22 }
  0x21   :  { %v182_v23 = vand.u32 4294901760, %v840_v18  ;;  %v203_v25 = vand.u32 4294901760, %v846_v20  ;;  %633 = vmatpush3.msra.mxu0 %v824_v7  ;;  %v210_v29 = vand.u32 4294901760, %v850_v21  ;;  %653 = vmatprep.mubr.msk.f32.mxu1 %vm800_vm1, %v797_v11 }
  0x22   :  { %v190_v26 = vsub.f32 %v837_v17, %v189_v22  ;;  %v197_v28 = vsub.f32 %v843_v19, %v196_v24  ;;  %634 = vmatprep.subr.mxu0 %v797_v11  ;;  %640 = vmatprep.mubr.msk.f32.mxu0 %vm800_vm1, %v797_v11  ;;  %p772_p13 = por %p771_p12, %p770_p11 }
  0x23   :  { %v183_v27 = vsub.f32 %v840_v18, %v182_v23  ;;  %722 = vset.pattern.permute.xlu0 %v798_v30  ;;  %v204_v33 = vsub.f32 %v846_v20, %v203_v25  ;;  %635 = vmatpush3.msra.mxu0 %v829_v13  ;;  %v211_v35 = vsub.f32 %v850_v21, %v210_v29 }
  0x24   :  { %59 = vrot.lane.b32.xlu1 %v38_v2, %s799_s0  ;;  %47 = vperm.xlu0 %722, %v709_v16   ;;  %v191_v32 = vand.u32 4294901760, %v190_v26  ;;  %v198_v34 = vand.u32 4294901760, %v197_v28  ;;  %p773_p0 = pnand %p772_p13, %p766_p10 }
  0x25   :  { %v184_v31 = vand.u32 4294901760, %v183_v27  ;;  %636 = vmatprep.subr.mxu0 %v797_v11  ;;  %v205_v36 = vand.u32 4294901760, %v204_v33  ;;  %v212_v37 = vand.u32 4294901760, %v211_v35 }
  0x26   :  { %637 = vmatpush3.msra.mxu0 %v831_v14 }
  0x27   :  { %644 = vmatpush3.msra.mxu1 %v184_v31  ;;  %638 = vmatprep.subr.mxu0 %v797_v11 }
  0x28   :  { %645 = vmatprep.subr.mxu1 %v797_v11  ;;  %639 = vmatpush3.msra.mxu0 %v834_v15 }
  0x29   :  { %646 = vmatpush3.msra.mxu1 %v191_v32  ;;  %656 = vmatprep.subr.mxu0 %v797_v11 }
  0x2a   :  { %647 = vmatprep.subr.mxu1 %v797_v11  ;;  %724 = vset.pattern.permute.xlu0 %v796_v1 }
  0x2b   :  { %648 = vmatpush3.msra.mxu1 %v198_v34 }
  0x2c   :  { %649 = vmatprep.subr.mxu1 %v797_v11 }
  0x2d   :  { %650 = vmatpush3.msra.mxu1 %v205_v36 }
  0x2e   :  { %651 = vmatprep.subr.mxu1 %v797_v11 }
  0x2f   :  { %652 = vmatpush3.msra.mxu1 %v212_v37 }
  0x30   :  { %669 = vmatprep.subr.mxu1 %v797_v11 }
  0x9a   :  { %v44_v39 = vpop.permute.xlu0 %43 }
  0x9b   :  { %v53_v40 = vpop.permute.xlu1 %52  ;;  %vm45_vm3 = vcmp.eq.s32.totalorder %v41_v41, %v44_v39 }
  0x9c   :  { %vm54_vm2 = vcmp.eq.s32.totalorder %v41_v41, %v53_v40 }
  0x9f   :  { %v48_v42 = vpop.permute.xlu0 %47  ;;  %v60_v43 = vpop.permute.xlu1 %59 }
  0xa0   :  { %vm49_vm4 = vcmp.eq.s32.totalorder %v41_v41, %v48_v42 }
  0xa1   :  { %vm50_vm5 = vmor %vm45_vm3, %vm49_vm4 }
  0xa2   :  { %vm55_vm7 = vmor %vm50_vm5, %vm54_vm2 }
  0xa3   :  { %v593_v44 = vsel %vm55_vm7, 1.0, %v797_v11 }
  0xa4   :  { %v63_v45 = vsel %vm62_vm6, %v593_v44, %v60_v43 }
  0xa5   :  { %v71_v46 = vsel %vm69_vm8, %v63_v45, 0 }
  0xa6   :  { %v147_v47 = vand.u32 4294901760, %v71_v46 }
  0xa8   :  { %v148_v48 = vsub.f32 %v71_v46, %v147_v47  ;;  %654 = vmatmul.mubr.f32.vlgmr.msra.gmra.mxu1 %v147_v47 }
  0xa9   :  { %670 = vmatpush3.msra.mxu1 %v827_v12  ;;  %679 = vmatprep.mubr.msk.f32.mxu1 %vm800_vm1, %v797_v11 }
  0xaa   :  { %671 = vmatprep.subr.mxu1 %v797_v11  ;;  %v149_v49 = vand.u32 4294901760, %v148_v48 }
  0xab   :  { %672 = vmatpush3.msra.mxu1 %v824_v7 }
  0xac   :  { %673 = vmatprep.subr.mxu1 %v797_v11  ;;  %v150_v50 = vsub.f32 %v148_v48, %v149_v49 }
  0xad   :  { %674 = vmatpush3.msra.mxu1 %v829_v13 }
  0xae   :  { %675 = vmatprep.subr.mxu1 %v797_v11  ;;  %v151_v51 = vand.u32 4294901760, %v150_v50 }
  0xaf   :  { %676 = vmatpush3.msra.mxu1 %v831_v14 }
  0xb0   :  { %677 = vmatprep.subr.mxu1 %v797_v11  ;;  %641 = vmatmul.mubr.f32.vlgmr.msra.gmra.mxu0 %v151_v51 }
  0xb1   :  { %657 = vmatpush3.msra.mxu0 %v840_v18  ;;  %678 = vmatpush3.msra.mxu1 %v834_v15 }
  0xb2   :  { %658 = vmatprep.subr.mxu0 %v797_v11  ;;  %680 = vmatmul.mubr.f32.vlgmr.msra.gmra.mxu1 %v149_v49 }
  0xb3   :  { %695 = vmatprep.subr.mxu1 %v797_v11  ;;  %659 = vmatpush3.msra.mxu0 %v837_v17 }
  0xb4   :  { %696 = vmatpush3.msra.mxu1 %v827_v12  ;;  %660 = vmatprep.subr.mxu0 %v797_v11 }
  0xb5   :  { %697 = vmatprep.subr.mxu1 %v797_v11  ;;  %661 = vmatpush3.msra.mxu0 %v843_v19 }
  0xb6   :  { %698 = vmatpush3.msra.mxu1 %v824_v7  ;;  %662 = vmatprep.subr.mxu0 %v797_v11 }
  0xb7   :  { %699 = vmatprep.subr.mxu1 %v797_v11  ;;  %663 = vmatpush3.msra.mxu0 %v846_v20 }
  0xb8   :  { %700 = vmatpush3.msra.mxu1 %v829_v13  ;;  %664 = vmatprep.subr.mxu0 %v797_v11 }
  0xb9   :  { %701 = vmatprep.subr.mxu1 %v797_v11  ;;  %665 = vmatpush3.msra.mxu0 %v850_v21 }
  0xba   :  { %666 = vmatprep.mubr.msk.f32.mxu0 %vm800_vm1, %v797_v11  ;;  %702 = vmatpush3.msra.mxu1 %v831_v14 }
  0xbb   :  { %667 = vmatmul.mubr.f32.vlgmr.msra.gmra.mxu0 %v148_v48  ;;  %682 = vmatprep.subr.mxu0 %v797_v11 }
  0xbc   :  { %703 = vmatprep.subr.mxu1 %v797_v11  ;;  %683 = vmatpush3.msra.mxu0 %v182_v23 }
  0xbd   :  { %704 = vmatpush3.msra.mxu1 %v834_v15  ;;  %705 = vmatprep.mubr.msk.f32.mxu1 %vm800_vm1, %v797_v11 }
  0xbe   :  { %684 = vmatprep.subr.mxu0 %v797_v11  ;;  %706 = vmatmul.mubr.f32.vlgmr.msra.gmra.mxu1 %v147_v47 }
  0xbf   :  { %685 = vmatpush3.msra.mxu0 %v189_v22  ;;  %692 = vmatprep.mubr.msk.f32.mxu0 %vm800_vm1, %v797_v11 }
  0xc0   :  { %686 = vmatprep.subr.mxu0 %v797_v11 }
  0xc1   :  { %687 = vmatpush3.msra.mxu0 %v196_v24 }
  0xc2   :  { %688 = vmatprep.subr.mxu0 %v797_v11 }
  0xc3   :  { %689 = vmatpush3.msra.mxu0 %v203_v25 }
  0xc4   :  { %690 = vmatprep.subr.mxu0 %v797_v11 }
  0xc5   :  { %691 = vmatpush3.msra.mxu0 %v210_v29 }
  0xc6   :  { %693 = vmatmul.mubr.f32.vlgmr.msra.gmra.mxu0 %v147_v47 }
 0x168   :  { %v249_v52 = vpop.f32.mrf.mxu1 }
 0x16a   :  { %v655_v53 = vpop.f32.mrf.mxu1 }
 0x170   :  { %v153_v54 = vpop.f32.mrf.mxu0 }
 0x171   :  { %v250_v61 = vadd.f32 %v249_v52, %v153_v54 }
 0x172   :  { %v409_v55 = vpop.f32.mrf.mxu1  ;;  %v642_v56 = vpop.f32.mrf.mxu0 }
 0x174   :  { %v681_v57 = vpop.f32.mrf.mxu1 }
 0x17b   :  { %v331_v58 = vpop.f32.mrf.mxu0 }
 0x17c   :  { %v332_v63 = vadd.f32 %v331_v58, %v250_v61 }
 0x17d   :  { %v668_v59 = vpop.f32.mrf.mxu0 }
 0x17e   :  { %v571_v60 = vpop.f32.mrf.mxu1  ;;  %v410_v0 = vadd.f32 %v409_v55, %v332_v63 }
 0x180   :  { %v707_v62 = vpop.f32.mrf.mxu1 }
 0x186   :  { %v495_v1 = vpop.f32.mrf.mxu0 }
 0x187   :  { %v496_v2 = vadd.f32 %v495_v1, %v410_v0 }
 0x188   :  { %v694_v3 = vpop.f32.mrf.mxu0 }
 0x189   :  { %v572_v4 = vadd.f32 %v571_v60, %v496_v2 }
 0x18b   :  { %576 = vst.msk [vmem:[#allocation7] sm:$0xff] %vm575_vm9, %v572_v4 }
 0x18c   :  { %776 = shalt.err (!%p773_p0)
}
 0x18d   :  { %586 = dma.vmem_to_hbm [thread:$0]  %s584_s21, 128, %s948_s2, [#allocation4]  }
 0x18e   :  { %789 = dma.done.wait [#allocation4], 128  }
 0x18f   :  { %790 = vsyncadd [#allocation4], 4294967168 }
 0x190   :  { %590 = vsyncpa [#allocation3], 1 }
 0x191   :  { %591 = vsyncpa [#allocation6], 1 }
 0x192   :  { %592 = vsyncpa [#allocation4], 1 }

</bundles_post_ra>
